<compile_context>
chip_gen: v7x
topology: tpu7x:2x2x1
jax: 0.10.0
libtpu: 0.0.40
codegen_flags: <defaults>
</compile_context>

<pallas_src>
import functools

import jax
import jax.numpy as jnp
from jax import lax
from jax.experimental import pallas as pl
from jax.experimental.pallas import tpu as pltpu

_LANES = 128


def _sublane_multiple(*dtypes):
    """Sublane packing multiple so (row_tile, col_tile) blocks tile natively."""
    min_itemsize = min(jnp.dtype(d).itemsize for d in dtypes)
    if min_itemsize >= 4:
        return 8
    if min_itemsize == 2:
        return 16
    return 32


def _pick_row_tile(bc, sub):
    """Smallest legal row tile dividing bc (maximizes parallel row blocks and
    keeps each row's contiguous DMA run long); fall back to the full dim."""
    for cand in (sub, 2 * sub, 4 * sub, 8 * sub):
        if cand <= bc and bc % cand == 0:
            return cand
    return bc  # full second-to-last dim is always a legal block size


def _vmem_budgets():
    """(double-buffered input budget, scoped vmem limit), generation-aware."""
    cap = None
    try:
        info = pltpu.get_tpu_info()
        for name in ("vmem_capacity_bytes", "vmem_bytes", "vmem_size_bytes"):
            v = getattr(info, name, None)
            if v:
                cap = int(v)
                break
    except Exception:
        cap = None
    if cap is not None and cap > (96 << 20):
        return 24 << 20, 48 << 20       # v5e / v6e (128 MiB physical VMEM)
    return 12 << 20, 36 << 20           # v7x (64 MiB) or unknown: keep headroom


def _dice_sums_kernel(p_ref, g_ref, inter_ref, union_ref, *,
                      col_tile, chunks_per_split, spatial_size, lane_groups,
                      ragged):
    c_split = pl.program_id(1)
    k = pl.program_id(2)

    @pl.when(k == 0)
    def _():
        inter_ref[...] = jnp.zeros_like(inter_ref)
        union_ref[...] = jnp.zeros_like(union_ref)

    row_tile = p_ref.shape[0]
    # Logical (un-clamped) chunk position: for the duplicated trailing step of
    # an odd split this lies past the array, so the mask zeroes the whole block.
    chunk_start = (c_split * chunks_per_split + k) * col_tile

    def accumulate(masked):
        if masked:
            lane_iota = lax.broadcasted_iota(jnp.int32, (row_tile, _LANES), 1)

        def body(j, carry):
            acc_i, acc_u = carry
            off = pl.multiple_of(j * _LANES, _LANES)
            # Cast after the load: HBM/VMEM traffic stays at native width,
            # accumulation is f32; intermediates are a handful of vregs.
            p = p_ref[:, pl.ds(off, _LANES)].astype(jnp.float32)
            g = g_ref[:, pl.ds(off, _LANES)].astype(jnp.float32)
            if masked:
                valid = (chunk_start + off + lane_iota) < spatial_size
                p = jnp.where(valid, p, 0.0)
                g = jnp.where(valid, g, 0.0)
            return acc_i + p * g, acc_u + (p + g)

        zero = jnp.zeros((row_tile, _LANES), jnp.float32)
        acc_i, acc_u = lax.fori_loop(0, lane_groups, body, (zero, zero),
                                     unroll=min(8, lane_groups))
        inter_ref[0, 0, :, :] += acc_i
        union_ref[0, 0, :, :] += acc_u

    if not ragged:
        accumulate(masked=False)
    else:
        needs_mask = chunk_start + col_tile > spatial_size

        @pl.when(jnp.logical_not(needs_mask))
        def _():
            accumulate(masked=False)

        @pl.when(needs_mask)
        def _():
            accumulate(masked=True)


def dice_loss(predict, gt, dims=(2, 3, 4), eps=1e-05):
    """Pallas implementation of DiceLoss.forward for equal-shape predict/gt.

    predict, gt: [b, c, z, y, x]; returns scalar 1 - mean(dice) as float32.
    """
    # TODO(synk): the F.upsample(mode='trilinear') resize branch (only taken on
    # spatial shape mismatch in the reference) is not implemented.
    assert predict.shape == gt.shape, "spatial shapes must match (no upsample path)"
    assert tuple(dims) == (2, 3, 4), "kernel assumes reduction over spatial dims"

    b, c = predict.shape[0], predict.shape[1]
    bc = b * c
    s = 1
    for d in predict.shape[2:]:
        s *= int(d)

    # Free reshapes only: no pad, no dtype copy.
    p2 = predict.reshape(bc, s)
    g2 = gt.reshape(bc, s)

    sub = _sublane_multiple(p2.dtype, g2.dtype)
    row_tile = _pick_row_tile(bc, sub)
    num_row_tiles = bc // row_tile

    in_bytes = jnp.dtype(p2.dtype).itemsize + jnp.dtype(g2.dtype).itemsize
    input_budget, vmem_limit = _vmem_budgets()

    # Column (lane-axis) tile: multiple of 128, from the double-buffered input
    # VMEM budget, capped so there are >= ~4 reduction steps to pipeline.
    col_tile_max = max(
        _LANES, (input_budget // (2 * row_tile * in_bytes)) // _LANES * _LANES)
    col_target = -(-s // 4)                          # aim for >= 4 chunks
    col_target = -(-col_target // _LANES) * _LANES   # round up to lane multiple
    col_tile = max(_LANES, min(col_tile_max, col_target))
    total_chunks = -(-s // col_tile)
    lane_groups = col_tile // _LANES

    # Split the reduction axis into 2 disjoint halves (extra "parallel" axis)
    # when there is no row parallelism, so both v7x TensorCores get work; each
    # half owns its own accumulator slab (summed in the epilogue).
    if (num_row_tiles == 1 and total_chunks >= 8
            and (total_chunks % 2 == 0 or total_chunks >= 16)):
        num_col_splits = 2
    else:
        num_col_splits = 1
    chunks_per_split = -(-total_chunks // num_col_splits)

    has_phantom = num_col_splits * chunks_per_split != total_chunks
    ragged = (s % col_tile != 0) or has_phantom

    if has_phantom:
        # Clamp so the duplicated trailing step of the shorter split fetches an
        # in-bounds block; the kernel masks it out via the logical chunk index.
        def _col_block(cs, k):
            return jnp.minimum(cs * chunks_per_split + k, total_chunks - 1)
    else:
        def _col_block(cs, k):
            return cs * chunks_per_split + k

    in_spec = pl.BlockSpec((row_tile, col_tile),
                           lambda r, cs, k: (r, _col_block(cs, k)))
    out_spec = pl.BlockSpec((1, 1, row_tile, _LANES),
                            lambda r, cs, k: (r, cs, 0, 0))
    acc_shape = jax.ShapeDtypeStruct(
        (num_row_tiles, num_col_splits, row_tile, _LANES), jnp.float32)

    kernel = functools.partial(
        _dice_sums_kernel,
        col_tile=col_tile,
        chunks_per_split=chunks_per_split,
        spatial_size=s,
        lane_groups=lane_groups,
        ragged=ragged,
    )

    out_bytes = 2 * num_row_tiles * num_col_splits * row_tile * _LANES * 4
    cost = pl.CostEstimate(
        flops=3 * bc * s,
        transcendentals=0,
        bytes_accessed=int(bc * s * in_bytes + out_bytes),
    )

    inter_p, union_p = pl.pallas_call(
        kernel,
        out_shape=(acc_shape, acc_shape),
        grid_spec=pltpu.PrefetchScalarGridSpec(
            num_scalar_prefetch=0,
            grid=(num_row_tiles, num_col_splits, chunks_per_split),
            in_specs=[in_spec, in_spec],
            out_specs=[out_spec, out_spec],
        ),
        compiler_params=pltpu.CompilerParams(
            dimension_semantics=("parallel", "parallel", "arbitrary"),
            vmem_limit_bytes=vmem_limit,
        ),
        cost_estimate=cost,
    )(p2, g2)

    intersection = jnp.sum(inter_p, axis=(1, 3)).reshape(bc)
    union = jnp.sum(union_p, axis=(1, 3)).reshape(bc)
    dice = (2.0 * intersection + eps) / (union + eps)
    return 1.0 - jnp.mean(dice)


def _reference_dice_loss(predict, gt, eps=1e-05):
    p = predict.astype(jnp.float32)
    g = gt.astype(jnp.float32)
    inter = jnp.sum(p * g, axis=(2, 3, 4))
    union = jnp.sum(p, axis=(2, 3, 4)) + jnp.sum(g, axis=(2, 3, 4))
    dice = (2.0 * inter + eps) / (union + eps)
    return 1.0 - jnp.mean(dice)


if __name__ == "__main__":
    key = jax.random.PRNGKey(0)
    k1, k2 = jax.random.split(key)

    b, c, z, y, x = 2, 4, 8, 16, 16   # [b, c, z, y, x]
    predict = jax.random.uniform(k1, (b, c, z, y, x), dtype=jnp.float32)
    gt = (jax.random.uniform(k2, (b, c, z, y, x), dtype=jnp.float32) > 0.5).astype(
        jnp.float32
    )

    loss = jax.block_until_ready(dice_loss(predict, gt))
    ref = jax.block_until_ready(_reference_dice_loss(predict, gt))
    assert jnp.allclose(loss, ref, rtol=1e-5, atol=1e-6), (loss, ref)
    print("KERNEL_OK")
</pallas_src>

<mosaic_0001>
module attributes {stable_mosaic.version = 11 : i64} {
  func.func @_dice_sums_kernel(%arg0: i32, %arg1: i32, %arg2: i32, %arg3: memref<8x512xf32, #tpu.memory_space<vmem>>, %arg4: memref<8x512xf32, #tpu.memory_space<vmem>>, %arg5: memref<1x1x8x128xf32, #tpu.memory_space<vmem>>, %arg6: memref<1x1x8x128xf32, #tpu.memory_space<vmem>>) attributes {dimension_semantics = [#tpu.dimension_semantics<parallel>, #tpu.dimension_semantics<parallel>, #tpu.dimension_semantics<arbitrary>], iteration_bounds = array<i64: 1, 1, 4>, scalar_prefetch = 0 : i64, scratch_operands = 0 : i64, tpu.core_type = #tpu.core_type<tc>, window_params = [{transform_indices = @transform_0, window_bounds = array<i64: 8, 512>}, {transform_indices = @transform_1, window_bounds = array<i64: 8, 512>}, {transform_indices = @transform_2, window_bounds = array<i64: 1, 1, 8, 128>}, {transform_indices = @transform_3, window_bounds = array<i64: 1, 1, 8, 128>}]} {
    %c0_i32 = arith.constant 0 : i32
    %0 = arith.cmpi eq, %arg2, %c0_i32 : i32
    %1 = arith.extui %0 : i1 to i32
    %c0_i32_0 = arith.constant 0 : i32
    %2 = arith.cmpi ne, %1, %c0_i32_0 : i32
    scf.if %2 {
      %cst_28 = arith.constant 0.000000e+00 : f32
      %56 = vector.broadcast %cst_28 : f32 to vector<1x1x8x128xf32>
      %c0_29 = arith.constant 0 : index
      %c0_30 = arith.constant 0 : index
      %c0_31 = arith.constant 0 : index
      %c0_32 = arith.constant 0 : index
      %57 = vector.load %arg5[%c0_29, %c0_30, %c0_31, %c0_32] : memref<1x1x8x128xf32, #tpu.memory_space<vmem>>, vector<1x1x8x128xf32>
      tpu.vector_store %arg5[%c0_29, %c0_30, %c0_31, %c0_32], %56 {strides = array<i32>} : memref<1x1x8x128xf32, #tpu.memory_space<vmem>>, vector<1x1x8x128xf32>,
      %cst_33 = arith.constant 0.000000e+00 : f32
      %58 = vector.broadcast %cst_33 : f32 to vector<1x1x8x128xf32>
      %c0_34 = arith.constant 0 : index
      %c0_35 = arith.constant 0 : index
      %c0_36 = arith.constant 0 : index
      %c0_37 = arith.constant 0 : index
      %59 = vector.load %arg6[%c0_34, %c0_35, %c0_36, %c0_37] : memref<1x1x8x128xf32, #tpu.memory_space<vmem>>, vector<1x1x8x128xf32>
      tpu.vector_store %arg6[%c0_34, %c0_35, %c0_36, %c0_37], %58 {strides = array<i32>} : memref<1x1x8x128xf32, #tpu.memory_space<vmem>>, vector<1x1x8x128xf32>,
    } else {
    }
    %cst = arith.constant 0.000000e+00 : f32
    %3 = vector.broadcast %cst : f32 to vector<8x128xf32>
    %c0_i32_1 = arith.constant 0 : i32
    %c128_i32 = arith.constant 128 : i32
    %4 = arith.muli %c0_i32_1, %c128_i32 : i32
    %5 = tpu.assume_multiple %4, 128 : i32
    %c0 = arith.constant 0 : index
    %6 = arith.index_cast %5 : i32 to index
    %7 = vector.load %arg3[%c0, %6] : memref<8x512xf32, #tpu.memory_space<vmem>>, vector<8x128xf32>
    %c0_2 = arith.constant 0 : index
    %8 = arith.index_cast %5 : i32 to index
    %9 = vector.load %arg4[%c0_2, %8] : memref<8x512xf32, #tpu.memory_space<vmem>>, vector<8x128xf32>
    %10 = arith.mulf %7, %9 : vector<8x128xf32>
    %11 = arith.addf %3, %10 : vector<8x128xf32>
    %12 = arith.addf %7, %9 : vector<8x128xf32>
    %13 = arith.addf %3, %12 : vector<8x128xf32>
    %c1_i32 = arith.constant 1 : i32
    %c128_i32_3 = arith.constant 128 : i32
    %14 = arith.muli %c1_i32, %c128_i32_3 : i32
    %15 = tpu.assume_multiple %14, 128 : i32
    %c0_4 = arith.constant 0 : index
    %16 = arith.index_cast %15 : i32 to index
    %17 = vector.load %arg3[%c0_4, %16] : memref<8x512xf32, #tpu.memory_space<vmem>>, vector<8x128xf32>
    %c0_5 = arith.constant 0 : index
    %18 = arith.index_cast %15 : i32 to index
    %19 = vector.load %arg4[%c0_5, %18] : memref<8x512xf32, #tpu.memory_space<vmem>>, vector<8x128xf32>
    %20 = arith.mulf %17, %19 : vector<8x128xf32>
    %21 = arith.addf %11, %20 : vector<8x128xf32>
    %22 = arith.addf %17, %19 : vector<8x128xf32>
    %23 = arith.addf %13, %22 : vector<8x128xf32>
    %c2_i32 = arith.constant 2 : i32
    %c128_i32_6 = arith.constant 128 : i32
    %24 = arith.muli %c2_i32, %c128_i32_6 : i32
    %25 = tpu.assume_multiple %24, 128 : i32
    %c0_7 = arith.constant 0 : index
    %26 = arith.index_cast %25 : i32 to index
    %27 = vector.load %arg3[%c0_7, %26] : memref<8x512xf32, #tpu.memory_space<vmem>>, vector<8x128xf32>
    %c0_8 = arith.constant 0 : index
    %28 = arith.index_cast %25 : i32 to index
    %29 = vector.load %arg4[%c0_8, %28] : memref<8x512xf32, #tpu.memory_space<vmem>>, vector<8x128xf32>
    %30 = arith.mulf %27, %29 : vector<8x128xf32>
    %31 = arith.addf %21, %30 : vector<8x128xf32>
    %32 = arith.addf %27, %29 : vector<8x128xf32>
    %33 = arith.addf %23, %32 : vector<8x128xf32>
    %c3_i32 = arith.constant 3 : i32
    %c128_i32_9 = arith.constant 128 : i32
    %34 = arith.muli %c3_i32, %c128_i32_9 : i32
    %35 = tpu.assume_multiple %34, 128 : i32
    %c0_10 = arith.constant 0 : index
    %36 = arith.index_cast %35 : i32 to index
    %37 = vector.load %arg3[%c0_10, %36] : memref<8x512xf32, #tpu.memory_space<vmem>>, vector<8x128xf32>
    %c0_11 = arith.constant 0 : index
    %38 = arith.index_cast %35 : i32 to index
    %39 = vector.load %arg4[%c0_11, %38] : memref<8x512xf32, #tpu.memory_space<vmem>>, vector<8x128xf32>
    %40 = arith.mulf %37, %39 : vector<8x128xf32>
    %41 = arith.addf %31, %40 : vector<8x128xf32>
    %42 = arith.addf %37, %39 : vector<8x128xf32>
    %43 = arith.addf %33, %42 : vector<8x128xf32>
    %c4_i32 = arith.constant 4 : i32
    %c0_12 = arith.constant 0 : index
    %c0_13 = arith.constant 0 : index
    %c0_14 = arith.constant 0 : index
    %c0_15 = arith.constant 0 : index
    %44 = vector.load %arg5[%c0_12, %c0_13, %c0_14, %c0_15] : memref<1x1x8x128xf32, #tpu.memory_space<vmem>>, vector<1x1x8x128xf32>
    %45 = vector.shape_cast %44 : vector<1x1x8x128xf32> to vector<8x128xf32>
    %46 = arith.addf %45, %41 : vector<8x128xf32>
    %c0_16 = arith.constant 0 : index
    %c0_17 = arith.constant 0 : index
    %c0_18 = arith.constant 0 : index
    %c0_19 = arith.constant 0 : index
    %47 = vector.load %arg5[%c0_16, %c0_17, %c0_18, %c0_19] : memref<1x1x8x128xf32, #tpu.memory_space<vmem>>, vector<1x1x8x128xf32>
    %48 = vector.shape_cast %47 : vector<1x1x8x128xf32> to vector<8x128xf32>
    %49 = vector.shape_cast %46 : vector<8x128xf32> to vector<1x1x8x128xf32>
    tpu.vector_store %arg5[%c0_16, %c0_17, %c0_18, %c0_19], %49 {strides = array<i32>} : memref<1x1x8x128xf32, #tpu.memory_space<vmem>>, vector<1x1x8x128xf32>,
    %c0_20 = arith.constant 0 : index
    %c0_21 = arith.constant 0 : index
    %c0_22 = arith.constant 0 : index
    %c0_23 = arith.constant 0 : index
    %50 = vector.load %arg6[%c0_20, %c0_21, %c0_22, %c0_23] : memref<1x1x8x128xf32, #tpu.memory_space<vmem>>, vector<1x1x8x128xf32>
    %51 = vector.shape_cast %50 : vector<1x1x8x128xf32> to vector<8x128xf32>
    %52 = arith.addf %51, %43 : vector<8x128xf32>
    %c0_24 = arith.constant 0 : index
    %c0_25 = arith.constant 0 : index
    %c0_26 = arith.constant 0 : index
    %c0_27 = arith.constant 0 : index
    %53 = vector.load %arg6[%c0_24, %c0_25, %c0_26, %c0_27] : memref<1x1x8x128xf32, #tpu.memory_space<vmem>>, vector<1x1x8x128xf32>
    %54 = vector.shape_cast %53 : vector<1x1x8x128xf32> to vector<8x128xf32>
    %55 = vector.shape_cast %52 : vector<8x128xf32> to vector<1x1x8x128xf32>
    tpu.vector_store %arg6[%c0_24, %c0_25, %c0_26, %c0_27], %55 {strides = array<i32>} : memref<1x1x8x128xf32, #tpu.memory_space<vmem>>, vector<1x1x8x128xf32>,
    return
  }
  func.func @transform_0(%arg0: i32, %arg1: i32, %arg2: i32) -> (i32, i32) {
    %c4_i32 = arith.constant 4 : i32
    %0 = arith.muli %arg1, %c4_i32 : i32
    %1 = arith.addi %0, %arg2 : i32
    %c0_i32 = arith.constant 0 : i32
    return %arg0, %1 : i32, i32
  }
  func.func @transform_1(%arg0: i32, %arg1: i32, %arg2: i32) -> (i32, i32) {
    %c4_i32 = arith.constant 4 : i32
    %0 = arith.muli %arg1, %c4_i32 : i32
    %1 = arith.addi %0, %arg2 : i32
    %c0_i32 = arith.constant 0 : i32
    return %arg0, %1 : i32, i32
  }
  func.func @transform_2(%arg0: i32, %arg1: i32, %arg2: i32) -> (i32, i32, i32, i32) {
    %c0_i32 = arith.constant 0 : i32
    %c0_i32_0 = arith.constant 0 : i32
    %c0_i32_1 = arith.constant 0 : i32
    return %arg0, %arg1, %c0_i32, %c0_i32_0 : i32, i32, i32, i32
  }
  func.func @transform_3(%arg0: i32, %arg1: i32, %arg2: i32) -> (i32, i32, i32, i32) {
    %c0_i32 = arith.constant 0 : i32
    %c0_i32_0 = arith.constant 0 : i32
    %c0_i32_1 = arith.constant 0 : i32
    return %arg0, %arg1, %c0_i32, %c0_i32_0 : i32, i32, i32, i32
  }
}

</mosaic_0001>

<bundles_post_ra>
// kernel: tpu_custom_call.1
= control target key start
LH: loop header
LB: loop body
LE: loop exit
PB: predicated region body
PF: predicated region fallthrough
CT: control target
= control target key end

     0   :  { %9 = vsyncpa [#allocation3], 0  ;;  %s979_s0 = inlined_call_operand.hbm [shape: f32[8,2048], index: 0, kind: input, shape index: {}]   ;;  %s980_s1 = inlined_call_operand.hbm [shape: f32[8,2048], index: 1, kind: input, shape index: {}]   ;;  %s981_s2 = inlined_call_operand.hbm [shape: f32[1,1,8,128], index: 2, kind: output, shape index: {0}]   ;;  %s982_s3 = inlined_call_operand.hbm [shape: f32[1,1,8,128], index: 3, kind: output, shape index: {1}]  }
   0x1   :  { %11 = vsyncpa [#allocation3 + $0x1], 0 }
   0x2   :  { %12 = vsyncpa [#allocation6], 0 }
   0x3   :  { %14 = vsyncpa [#allocation6 + $0x1], 0 }
   0x4   :  { %15 = vsyncpa [#allocation4], 0 }
   0x5   :  { %16 = vsyncpa [#allocation9], 0  ;;  %s752_s12 = smov 0   ;;  %s754_s13 = smov 0  }
   0x6   :  { %s756_s14 = smov 0   ;;  %s758_s15 = smov 0  }
   0x7   :  { %s760_s16 = smov 0   ;;  %s762_s17 = smov 0  }
   0x8 LB: > { %s449_s18 = sadd.s32 4294967295, %s725_s17   ;;  %s34_s19 = sadd.s32 1, %s721_s16  ;;  %s725_s17 = sphi %s762_s17, %s22_s17   ;;  %s721_s16 = sphi %s760_s16, %s997_s16   ;;  %s717_s15 = sphi %s758_s15, %s996_s15   ;;  %s713_s14 = sphi %s756_s14, %s995_s14   ;;  %s709_s13 = sphi %s754_s13, %s994_s13   ;;  %s705_s12 = sphi %s752_s12, %s993_s12  }
   0x9   : > { %p35_p0 = scmp.ge.s32.totalorder %s34_s19, 4  ;;  %s54_s20 = sadd.s32 1, %s713_s14 }
   0xa   : > { %p61_p1 = scmp.ne.s32.totalorder %s713_s14, %s709_s13  ;;  %p62_p2 = scmp.eq.s32.totalorder %s725_s17, 0 }
   0xb   : > { %s999_s19 = smov (%p35_p0, %s34_s19), 0  ;;  %p67_p4 = scmp.ne.s32.totalorder %s709_s13, %s705_s12 }
   0xc   : > { %p788_p3 = por %p62_p2, %p61_p1  ;;  %s50_s22 = ssub.s32 %s721_s16, %s999_s19 }
   0xd   : > { %p68_p5 = scmp.eq.s32.totalorder %s449_s18, 0  ;;  %p52_p6 = scmp.eq.s32.totalorder %s50_s22, 0 }
   0xe   : > { %p495_p8 = scmp.lt.s32.totalorder %s725_s17, 4  ;;  %s806_s25 = sand.u32 1, %s713_s14  }
   0xf   : > { %p797_p7 = por %p68_p5, %p67_p4  ;;  %s474_s26 = sshll.u32 %s721_s16, 9 }
  0x10   : > { %s803_s24 = scalar_select %p52_p6, %s713_s14, %s54_s20  }
  0x11   : > { %s985_s23 = scalar_select %p797_p7, 1, 0 }
  0x12   : > { %s452_s27 = sshll.u32 %s806_s25, 5  ;;  %s815_s30 = scalar_lea.hbm %s979_s0, %s474_s26 }
  0x13   : > { %s183_s4 = scalar_lea.vmem [#allocation2], %s452_s27  ;;  %p821_p9 = pnand %p495_p8, %p788_p3 }
  0x14   : > { %s195_s5 = sshll.u32 %s183_s4, 4  ;;  %s180_s7 = scalar_lea.sflag [#allocation3], %s806_s25  ;;  %s825_s5 = int_to_ptr.vmem [resolvable:$true] %s195_s5 }
  0x15   : > { %s551_s8 = scalar_lea.hbm %s815_s30, 512  ;;  %p553_p13 = pneg %p821_p9 }
  0x16   : > { %p552_p12 = scmp.ne.s32.totalorder %s815_s30, %s551_s8  ;;  %s556_s11 = scalar_lea.hbm %s979_s0, 2048 }
  0x17   : > { %p557_p2 = scmp.lt.u32.totalorder %s815_s30, %s979_s0  ;;  %p558_p3 = scmp.lt.u32.totalorder %s556_s11, %s551_s8 }
  0x18   : > { %p554_p0 = pnand %p553_p13, %p552_p12  ;;  %p560_p5 = scmp.lt.u32.totalorder %s551_s8, %s815_s30 }
  0x19   : > { %p559_p4 = por %p558_p3, %p557_p2 }
  0x1a   : > { %p555_p1 = pneg %p554_p0 }
  0x1b   : > { %p561_p6 = por %p560_p5, %p559_p4 }
  0x1d   : > { %p562_p8 = pnand %p561_p6, %p555_p1 }
  0x1f   : > { %565 = shalt.err (!%p562_p8)
}
  0x20   : > { %s566_s21 = scalar_lea.vmem %s825_s5, 512  ;;  %s727_s22 = smov [#allocation2]  }
  0x21   : > { %p567_p12 = scmp.ne.s32.totalorder %s825_s5, %s566_s21  ;;  %s571_s28 = sshll.u32 %s727_s22, 4  ;;  %s572_s28 = int_to_ptr.vmem [resolvable:$false] %s571_s28 }
  0x22   : > { %s573_s29 = scalar_lea.vmem %s572_s28, 1024  ;;  %p574_p11 = scmp.lt.s32.totalorder %s825_s5, %s572_s28 }
  0x23   : > { %p569_p0 = pnand %p567_p12, %p553_p13  ;;  %p575_p2 = scmp.lt.s32.totalorder %s573_s29, %s566_s21 }
  0x25   : > { %p570_p10 = pneg %p569_p0  ;;  %p576_p3 = por %p575_p2, %p574_p11 }
  0x27   : > { %p577_p4 = pnand %p576_p3, %p570_p10 }
  0x29   : > { %580 = shalt.err (!%p577_p4)
}
  0x2a   : > { %491 = dma.hbm_to_vmem [thread:$0]  (!%p821_p9), %s815_s30, 512, %s825_s5, %s180_s7  }
  0x2b   : > { %p987_p1 = scmp.lt.s32.totalorder %s725_s17, 5  ;;  %p988_p5 = scmp.ge.s32.totalorder %s725_s17, 1 }
  0x2c   : > { %s868_s10 = scalar_lea.hbm %s980_s1, %s474_s26  ;;  %s206_s11 = scalar_lea.vmem [#allocation5], %s452_s27 }
  0x2d   : > { %p859_p6 = pnand %p988_p5, %p987_p1  ;;  %s218_s12 = sshll.u32 %s206_s11, 4  ;;  %s219_s12 = int_to_ptr.vmem [resolvable:$true] %s218_s12 }
  0x2e   : > { %s203_s30 = scalar_lea.sflag [#allocation6], %s806_s25  ;;  %s581_s5 = scalar_lea.hbm %s868_s10, 512 }
  0x2f   : > { %s989_s4 = scalar_select %p859_p6, 1, 0 }
  0x30   : > { %p582_p10 = scmp.ne.s32.totalorder %s868_s10, %s581_s5  ;;  %s586_s26 = scalar_lea.hbm %s980_s1, 2048 }
  0x31   : > { %p587_p12 = scmp.lt.u32.totalorder %s868_s10, %s980_s1  ;;  %p588_p0 = scmp.lt.u32.totalorder %s586_s26, %s581_s5 }
  0x32   : > { %p584_p11 = pnand %p582_p10, %p553_p13  ;;  %p590_p3 = scmp.lt.u32.totalorder %s581_s5, %s868_s10 }
  0x33   : > { %p589_p2 = por %p588_p0, %p587_p12 }
  0x34   : > { %p585_p8 = pneg %p584_p11 }
  0x35   : > { %p591_p4 = por %p590_p3, %p589_p2 }
  0x37   : > { %p592_p1 = pnand %p591_p4, %p585_p8 }
  0x39   : > { %595 = shalt.err (!%p592_p1)
}
  0x3a   : > { %s596_s25 = scalar_lea.vmem %s219_s12, 512  ;;  %s728_s27 = smov [#allocation5]  }
  0x3b   : > { %p597_p5 = scmp.ne.s32.totalorder %s219_s12, %s596_s25  ;;  %s601_s28 = sshll.u32 %s728_s27, 4  ;;  %s602_s28 = int_to_ptr.vmem [resolvable:$false] %s601_s28 }
  0x3c   : > { %s603_s29 = scalar_lea.vmem %s602_s28, 1024  ;;  %p604_p7 = scmp.lt.s32.totalorder %s219_s12, %s602_s28 }
  0x3d   : > { %p599_p10 = pnand %p597_p5, %p553_p13  ;;  %p605_p6 = scmp.lt.s32.totalorder %s603_s29, %s596_s25 }
  0x3f   : > { %p600_p11 = pneg %p599_p10  ;;  %p606_p0 = por %p605_p6, %p604_p7 }
  0x41   : > { %p607_p12 = pnand %p606_p0, %p600_p11 }
  0x43   : > { %610 = shalt.err (!%p607_p12)
}
  0x44   : > { %494 = dma.hbm_to_vmem [thread:$0]  (!%p821_p9), %s868_s10, 512, %s219_s12, %s203_s30  }
  0x45   : > { %p990_p8 = scmp.ne.s32.totalorder %s989_s4, 0 }
  0x46   : > { %s229_s8 = sand.u32 (!%p990_p8), 1, %s709_s13   ;;  %p991_p13 = scmp.ne.s32.totalorder (!%p990_p8), %s985_s23, 0 }
  0x47   : > { %227 = sbr.rel (%p990_p8) target bundleno = 141 (0x8d), region = 28  ;;  %s459_s9 = sshll.u32 (!%p990_p8), %s229_s8, 5 }
  0x48   : > { %s230_s11 = scalar_lea.sflag (!%p990_p8), [#allocation3], %s229_s8  ;;  %s233_s5 = scalar_lea.vmem (!%p990_p8), [#allocation2], %s459_s9 }
  0x4e   : > { %688 = dma.done.wait (%p991_p13), %s230_s11, 512  }
  0x4f   : > { %690 = vsyncadd (%p991_p13), %s230_s11, 4294966784  ;;  %s239_s7 = scalar_lea.sflag [#allocation6], %s229_s8  ;;  %s242_s20 = scalar_lea.vmem [#allocation5], %s459_s9 }
  0x50   : > { %692 = dma.done.wait (%p991_p13), %s239_s7, 512  }
  0x51   : > { %694 = vsyncadd (%p991_p13), %s239_s7, 4294966784  ;;  %p461_p7 = scmp.ne.s32.totalorder %s717_s15, 0 }
  0x52   : > { %v729_v0 = vmov (!%p461_p7), 0.0  }
  0x53   : > { %274 = sbr.rel (%p461_p7) target bundleno = 90 (0x5a), region = 40  ;;  %275 = vst [vmem:[#allocation7] sm:$0xff] (!%p461_p7), %v729_v0  ;;  %276 = vst [vmem:[#allocation8] sm:$0xff] (!%p461_p7), %v729_v0 }
  0x5a PF: > { %v277_v1 = vld [vmem:[%s233_s5] sm:$0xff]  ;;  %v462_v3 = vld [vmem:[%s233_s5 + $0x8] sm:$0xff]  ;;  %v464_v6 = vld [vmem:[%s233_s5 + $0x10] sm:$0xff]  ;;  %s730_s15 = smov [#allocation7]   ;;  %s731_s6 = smov [#allocation8]  }
  0x5b   : > { %v278_v2 = vld [vmem:[%s242_s20] sm:$0xff]  ;;  %v463_v5 = vld [vmem:[%s242_s20 + $0x8] sm:$0xff]  ;;  %v465_v7 = vld [vmem:[%s242_s20 + $0x10] sm:$0xff]  ;;  %s323_s23 = sshll.u32 %s730_s15, 4  ;;  %s337_s4 = sshll.u32 %s731_s6, 4  ;;  %s324_s23 = int_to_ptr.vmem [resolvable:$true] %s323_s23  ;;  %s910_s4 = int_to_ptr.vmem [resolvable:$true] %s337_s4 }
  0x5c   : > { %v279_v4 = vmul.f32 %v278_v2, %v277_v1  ;;  %v281_v8 = vadd.f32 %v278_v2, %v277_v1  ;;  %v287_v9 = vmul.f32 %v463_v5, %v462_v3  ;;  %v295_v10 = vmul.f32 %v465_v7, %v464_v6  ;;  %v466_v11 = vld [vmem:[%s233_s5 + $0x18] sm:$0xff]  ;;  %v307_v21 = vld [vmem:[#allocation7] sm:$0xff]  ;;  %v310_v22 = vld [vmem:[#allocation8] sm:$0xff]  ;;  %p906_p9 = scmp.eq.s32.totalorder %s449_s18, 3  ;;  %s611_s12 = scalar_lea.vmem %s324_s23, 128 }
  0x5d   : > { %v467_v12 = vld [vmem:[%s242_s20 + $0x18] sm:$0xff]  ;;  %v289_v13 = vadd.f32 %v463_v5, %v462_v3  ;;  %v297_v14 = vadd.f32 %v465_v7, %v464_v6  ;;  %p612_p6 = scmp.ne.s32.totalorder %s324_s23, %s611_s12  ;;  %p618_p4 = scmp.lt.s32.totalorder %s324_s23, %s324_s23 }
  0x5e   : > { %v288_v15 = vadd.f32 %v287_v9, %v279_v4  ;;  %v303_v16 = vmul.f32 %v467_v12, %v466_v11  ;;  %v305_v18 = vadd.f32 %v467_v12, %v466_v11  ;;  %p619_p1 = scmp.lt.s32.totalorder %s611_s12, %s611_s12 }
  0x5f   : > { %v290_v17 = vadd.f32 %v289_v13, %v281_v8  ;;  %p613_p2 = pnand %p612_p6, %p906_p9 }
  0x60   : > { %v296_v19 = vadd.f32 %v295_v10, %v288_v15  ;;  %p620_p5 = por %p619_p1, %p618_p4 }
  0x61   : > { %v298_v20 = vadd.f32 %v297_v14, %v290_v17  ;;  %p614_p3 = pneg %p613_p2 }
  0x62   : > { %v304_v23 = vadd.f32 %v303_v16, %v296_v19 }
  0x63   : > { %v306_v24 = vadd.f32 %v305_v18, %v298_v20  ;;  %p621_p10 = pnand %p620_p5, %p614_p3 }
  0x64   : > { %v308_v25 = vadd.f32 %v307_v21, %v304_v23 }
  0x65   : > { %v311_v26 = vadd.f32 %v310_v22, %v306_v24 }
  0x66   : > { %309 = vst [vmem:[#allocation7] sm:$0xff] %v308_v25 }
  0x67   : > { %312 = vst [vmem:[#allocation8] sm:$0xff] %v311_v26 }
  0x68   : > { %624 = shalt.err (!%p621_p10)
}
  0x69   : > { %s625_s26 = scalar_lea.hbm %s981_s2, 128 }
  0x6a   : > { %p626_p11 = scmp.ne.s32.totalorder %s981_s2, %s625_s26  ;;  %p631_p8 = scmp.lt.u32.totalorder %s625_s26, %s981_s2 }
  0x6c   : > { %p627_p0 = pnand %p626_p11, %p906_p9 }
  0x6e   : > { %p628_p12 = pneg %p627_p0 }
  0x70   : > { %p633_p13 = pnand %p631_p8, %p628_p12 }
  0x72   : > { %636 = shalt.err (!%p633_p13)
}
  0x73   : > { %481 = dma.vmem_to_hbm [thread:$0]  (%p906_p9), %s324_s23, 128, %s981_s2, [#allocation4]  }
  0x74   : > { %s637_s8 = scalar_lea.vmem %s910_s4, 128  ;;  %p644_p3 = scmp.lt.s32.totalorder %s910_s4, %s910_s4 }
  0x75   : > { %p638_p7 = scmp.ne.s32.totalorder %s910_s4, %s637_s8  ;;  %p645_p4 = scmp.lt.s32.totalorder %s637_s8, %s637_s8 }
  0x77   : > { %p639_p6 = pnand %p638_p7, %p906_p9  ;;  %p646_p1 = por %p645_p4, %p644_p3 }
  0x79   : > { %p640_p2 = pneg %p639_p6 }
  0x7b   : > { %p647_p5 = pnand %p646_p1, %p640_p2 }
  0x7d   : > { %650 = shalt.err (!%p647_p5)
}
  0x7e   : > { %s651_s5 = scalar_lea.hbm %s982_s3, 128 }
  0x7f   : > { %p652_p10 = scmp.ne.s32.totalorder %s982_s3, %s651_s5  ;;  %p657_p12 = scmp.lt.u32.totalorder %s651_s5, %s982_s3 }
  0x81   : > { %p653_p11 = pnand %p652_p10, %p906_p9 }
  0x83   : > { %p654_p0 = pneg %p653_p11 }
  0x85   : > { %p659_p8 = pnand %p657_p12, %p654_p0 }
  0x87   : > { %662 = shalt.err (!%p659_p8)
}
  0x88   : > { %483 = dma.vmem_to_hbm [thread:$0]  (%p906_p9), %s910_s4, 128, %s982_s3, [#allocation9]  }
  0x89   : > { %696 = dma.done.wait (%p906_p9), [#allocation4], 128  }
  0x8a   : > { %698 = vsyncadd (%p906_p9), [#allocation4], 4294967168 }
  0x8b   : > { %700 = dma.done.wait (%p906_p9), [#allocation9], 128  }
  0x8c   : > { %702 = vsyncadd (%p906_p9), [#allocation9], 4294967168 }
  0x8d PF: > { %s22_s17 = sadd.s32 1, %s725_s17   ;;  %s993_s12 = smov %s709_s13 }
  0x8e   : > { %p19_p13 = scmp.ge.s32.totalorder %s22_s17, 6   ;;  %s994_s13 = smov %s713_s14 }
  0x8f   : > { %s995_s14 = smov %s803_s24  ;;  %s996_s15 = smov %s721_s16 }
  0x90   : > { %s997_s16 = smov %s999_s19  ;;  %21 = sbr.rel (!%p19_p13) target bundleno = 8 (0x8), region = 98 }
  0x97   :  { %354 = vsyncpa [#allocation3], 1 }
  0x98   :  { %356 = vsyncpa [#allocation3 + $0x1], 1 }
  0x99   :  { %357 = vsyncpa [#allocation6], 1 }
  0x9a   :  { %359 = vsyncpa [#allocation6 + $0x1], 1 }
  0x9b   :  { %360 = vsyncpa [#allocation4], 1 }
  0x9c   :  { %362 = vsyncpa [#allocation4 + $0x1], 1 }
  0x9d   :  { %363 = vsyncpa [#allocation9], 1 }

</bundles_post_ra>
